<compile_context>
chip_gen: v7x
topology: tpu7x:2x2x1
jax: 0.10.0
libtpu: 0.0.40
codegen_flags: <defaults>
</compile_context>

<pallas_src>
import functools

import jax
import jax.numpy as jnp
from jax.experimental import pallas as pl
from jax.experimental.pallas import tpu as pltpu


# bf16 MXU operands with f32 accumulation (recommended by the perf review).  Outputs differ
# from the fp32 PyTorch reference only by bf16 operand rounding.
USE_BF16_MATMUL = True


def _round_up(x, m):
    return ((x + m - 1) // m) * m


def _vmem_limit_bytes():
    # Generation-aware scoped-VMEM cap: v7x has only 64 MiB per TC (vs 128 MiB on v5e/v6e),
    # so never request the whole thing.
    try:
        cap = pltpu.get_tpu_info().vmem_capacity_bytes
        return int(min(64 * 1024 * 1024, cap * 3 // 4))
    except Exception:  # pragma: no cover - conservative fallback
        return 48 * 1024 * 1024


_VMEM_LIMIT = _vmem_limit_bytes()


# ----------------------------- Pallas kernels ------------------------------

def _gnn_layer_kernel(a_ref, b_ref, s_ref, wo_ref, wi_ref, ws_ref, bias_ref, o_ref,
                      *, apply_tanh):
    # Fused CompGCN layer: 1/3 combine + eval-BN already folded into the three weights/bias.
    acc = jnp.dot(a_ref[...], wo_ref[...], preferred_element_type=jnp.float32)
    acc = acc + jnp.dot(b_ref[...], wi_ref[...], preferred_element_type=jnp.float32)
    acc = acc + jnp.dot(s_ref[...], ws_ref[...], preferred_element_type=jnp.float32)
    acc = acc + bias_ref[...]
    if apply_tanh:
        acc = jnp.tanh(acc)
    o_ref[...] = acc


def _linear_kernel(x_ref, w_ref, b_ref, o_ref):
    o_ref[...] = (jnp.dot(x_ref[...], w_ref[...], preferred_element_type=jnp.float32)
                  + b_ref[...])


def _transe_l1_kernel(q_ref, c_ref, o_ref, *, sign, gamma):
    # q_ref: (B, D)  -- broadcast in-kernel, never materialized as a (B, N, D) cube in HBM.
    # c_ref: (tn, D) candidate tile;  o_ref: (B, tn) lane-dense.
    q = q_ref[...]
    c = c_ref[...]
    diff = q[:, None, :] + sign * c[None, :, :]
    dist = jnp.sum(jnp.abs(diff), axis=-1)
    o_ref[...] = jax.nn.sigmoid(gamma - dist)


def _transe_l2_kernel(q_ref, c_ref, o_ref, *, sign, gamma):
    # Gram decomposition: ||q ± c||² = ||q||² + ||c||² ± 2 q·c  (MXU matmul per tile).
    q = q_ref[...]
    c = c_ref[...]
    qc = jnp.dot(q, c.T, preferred_element_type=jnp.float32)        # (B, tn)
    q2 = jnp.sum(q * q, axis=-1, keepdims=True)                     # (B, 1)
    c2 = jnp.sum(c * c, axis=-1)                                    # (tn,)
    sq = jnp.maximum(q2 + c2[None, :] + 2.0 * sign * qc, 0.0)
    o_ref[...] = jax.nn.sigmoid(gamma - jnp.sqrt(sq))


# ----------------------------- kernel wrappers ------------------------------

def _row_tiling(M, row_tile):
    """Pick a row tile.  Split into >=2 grid steps when possible so both v7x TCs get work."""
    tm = min(row_tile, _round_up(M, 8))
    if pl.cdiv(M, tm) < 2 and M > 8:
        tm = _round_up(pl.cdiv(M, 2), 8)
    return tm, pl.cdiv(M, tm)


def fused_linear(x, w, b, *, row_tile=512, use_bf16=USE_BF16_MATMUL):
    """Row-tiled (x @ w + b).  Output columns padded to a lane-dense multiple of 128."""
    M, K = x.shape
    O = w.shape[1]
    Op = _round_up(O, 128)
    if Op != O:
        w = jnp.pad(w, ((0, 0), (0, Op - O)))
        b = jnp.pad(b, ((0, Op - O),))
    dt = jnp.bfloat16 if use_bf16 else jnp.float32
    xd, wd = x.astype(dt), w.astype(dt)
    b2 = b.reshape(1, Op).astype(jnp.float32)
    tm, gm = _row_tiling(M, row_tile)

    out = pl.pallas_call(
        _linear_kernel,
        grid=(gm,),
        in_specs=[pl.BlockSpec((tm, K), lambda i: (i, 0)),
                  pl.BlockSpec((K, Op), lambda i: (0, 0)),
                  pl.BlockSpec((1, Op), lambda i: (0, 0))],
        out_specs=pl.BlockSpec((tm, Op), lambda i: (i, 0)),
        out_shape=jax.ShapeDtypeStruct((M, Op), jnp.float32),
        compiler_params=pltpu.CompilerParams(
            dimension_semantics=("parallel",),
            vmem_limit_bytes=_VMEM_LIMIT),
    )(xd, wd, b2)
    return out[:, :O] if Op != O else out


def gnn_fused_linear(agg_fwd, agg_rev, node_embs, w_o, w_i, w_s, bias, *,
                     apply_tanh, row_tile=512, use_bf16=USE_BF16_MATMUL):
    """Fused CompGCN layer matmul: three row-tiled inputs, no (N, 3K) HBM concat."""
    M, K = node_embs.shape
    O = w_o.shape[1]
    Op = _round_up(O, 128)
    if Op != O:
        pad_cols = ((0, 0), (0, Op - O))
        w_o = jnp.pad(w_o, pad_cols)
        w_i = jnp.pad(w_i, pad_cols)
        w_s = jnp.pad(w_s, pad_cols)
        bias = jnp.pad(bias, ((0, Op - O),))
    dt = jnp.bfloat16 if use_bf16 else jnp.float32
    a, b_, s = agg_fwd.astype(dt), agg_rev.astype(dt), node_embs.astype(dt)
    wo, wi, ws = w_o.astype(dt), w_i.astype(dt), w_s.astype(dt)
    b2 = bias.reshape(1, Op).astype(jnp.float32)
    tm, gm = _row_tiling(M, row_tile)

    out = pl.pallas_call(
        functools.partial(_gnn_layer_kernel, apply_tanh=apply_tanh),
        grid=(gm,),
        in_specs=[pl.BlockSpec((tm, K), lambda i: (i, 0)),
                  pl.BlockSpec((tm, K), lambda i: (i, 0)),
                  pl.BlockSpec((tm, K), lambda i: (i, 0)),
                  pl.BlockSpec((K, Op), lambda i: (0, 0)),
                  pl.BlockSpec((K, Op), lambda i: (0, 0)),
                  pl.BlockSpec((K, Op), lambda i: (0, 0)),
                  pl.BlockSpec((1, Op), lambda i: (0, 0))],
        out_specs=pl.BlockSpec((tm, Op), lambda i: (i, 0)),
        out_shape=jax.ShapeDtypeStruct((M, Op), jnp.float32),
        compiler_params=pltpu.CompilerParams(
            dimension_semantics=("parallel",),
            vmem_limit_bytes=_VMEM_LIMIT),
    )(a, b_, s, wo, wi, ws, b2)
    return out[:, :O] if Op != O else out


def _pick_cand_tile(B, D, N, norm):
    if norm == 2:
        tn = 1024                              # MXU path: tile is cheap, amortize overhead
    else:
        budget = 128 * 1024                    # keep live (B, tn, D) diff well inside vregs
        tn = (budget // max(B * D * 4, 1)) // 128 * 128
        tn = max(128, min(tn, 2048))
    tn = min(tn, _round_up(N, 128))
    if pl.cdiv(N, tn) < 2 and N > 128:         # feed both v7x TensorCores when possible
        tn = _round_up(pl.cdiv(N, 2), 128)
    return tn


def transe_score(q, candidates, *, sign, gamma, norm):
    """score[b, j] = sigmoid(gamma - || q_b + sign * candidate_j ||_p), candidate-tiled."""
    B, D = q.shape
    N = candidates.shape[0]
    tn = _pick_cand_tile(B, D, N, norm)
    kern = _transe_l2_kernel if norm == 2 else _transe_l1_kernel

    out = pl.pallas_call(
        functools.partial(kern, sign=float(sign), gamma=float(gamma)),
        grid=(pl.cdiv(N, tn),),
        in_specs=[pl.BlockSpec((B, D), lambda j: (0, 0)),
                  pl.BlockSpec((tn, D), lambda j: (j, 0))],
        out_specs=pl.BlockSpec((B, tn), lambda j: (0, j)),
        out_shape=jax.ShapeDtypeStruct((B, N), jnp.float32),
        compiler_params=pltpu.CompilerParams(
            dimension_semantics=("parallel",),
            vmem_limit_bytes=_VMEM_LIMIT),
    )(q.astype(jnp.float32), candidates.astype(jnp.float32))
    return out


# ----------------------------- model (glue) ---------------------------------

def preprocess_graph(src, dst, num_nodes):
    """Graph-structure preprocessing, computed once and reused by both GNN layers."""
    ones = jnp.ones(src.shape, jnp.float32)
    deg_in = jnp.zeros((num_nodes,), jnp.float32).at[dst].add(ones)    # fwd-graph in-degree
    deg_out = jnp.zeros((num_nodes,), jnp.float32).at[src].add(ones)   # rev-graph in-degree
    return {
        "src": src, "dst": dst, "num_nodes": num_nodes,
        "inv_deg_in": 1.0 / jnp.maximum(deg_in, 1.0),   # sum is 0 when degree is 0 -> mean 0
        "inv_deg_out": 1.0 / jnp.maximum(deg_out, 1.0),
    }


def fold_compgcn_layer_params(p, eps=1e-5):
    """Fold the 1/3 combine + eval-mode BatchNorm into the three branch weights + bias."""
    bn = p["bn"]
    scale_bn = bn["gamma"] * jax.lax.rsqrt(bn["running_var"] + eps)         # (O,)
    w_scale = (scale_bn / 3.0)[None, :]
    wo = p["W_O"]["w"] * w_scale
    wi = p["W_I"]["w"] * w_scale
    ws = p["W_S"]["w"] * w_scale
    b_sum = (p["W_O"]["b"] + p["W_I"]["b"] + p["W_S"]["b"]) / 3.0
    bias = (b_sum - bn["running_mean"]) * scale_bn + bn["beta"]
    return wo, wi, ws, bias


def compgcn_layer(folded, graph, node_embs, edge_feats, *, apply_tanh, use_bf16):
    """One CompGCNLayer (comp_opt='TransE', no taxo weights, no polar aggr), fused."""
    src, dst = graph["src"], graph["dst"]
    N, D = graph["num_nodes"], node_embs.shape[1]
    # TODO(synk): data-dependent gather + segment-mean stays in XLA (index scatter-add);
    # no clean static-BlockSpec Pallas equivalent without a dense incidence matmul.
    msg_fwd = node_embs[src] - edge_feats                  # fwd graph: lands on dst
    msg_rev = node_embs[dst] - edge_feats                  # rev graph: lands on src
    agg_fwd = jnp.zeros((N, D), jnp.float32).at[dst].add(msg_fwd) * graph["inv_deg_in"][:, None]
    agg_rev = jnp.zeros((N, D), jnp.float32).at[src].add(msg_rev) * graph["inv_deg_out"][:, None]
    wo, wi, ws, bias = folded
    return gnn_fused_linear(agg_fwd, agg_rev, node_embs, wo, wi, ws, bias,
                            apply_tanh=apply_tanh, use_bf16=use_bf16)


def compgcn_transe_forward(params, src, dst, e_vid, node_embs, edge_embs,
                           hids, rids, tids, is_head_pred, gamma, norm, gcn_layer,
                           use_bf16=USE_BF16_MATMUL):
    N = node_embs.shape[0]
    E = src.shape[0]
    graph = preprocess_graph(src, dst, N)                        # hoisted, reused by both layers

    he = edge_embs[jnp.squeeze(e_vid, -1)]                       # (E, K) edge features
    rel_in = edge_embs[rids]                                     # (B, K)

    # Batched W_rel1 projection: one kernel for both the gnn2 edge features and the rels.
    if gcn_layer == 2:
        proj_in = jnp.concatenate([he, rel_in], axis=0)
    else:
        proj_in = rel_in
    proj = fused_linear(proj_in, params["W_rel1"]["w"], params["W_rel1"]["b"], use_bf16=use_bf16)
    if gcn_layer == 2:
        he2, rels = proj[:E], proj[E:]
    else:
        rels = proj
    # dropout(rels) = identity (eval)

    # gnn1 (+ fused tanh epilogue)
    hn = compgcn_layer(fold_compgcn_layer_params(params["gnn1"]), graph, node_embs, he,
                       apply_tanh=True, use_bf16=use_bf16)
    if gcn_layer == 2:
        hn = compgcn_layer(fold_compgcn_layer_params(params["gnn2"]), graph, hn, he2,
                           apply_tanh=False, use_bf16=use_bf16)

    # hn = dropout(hn) -> identity (eval)
    heads = hn[hids]
    tails = hn[tids]

    # NOTE: is_head_pred must remain a static Python int (matches the PyTorch int argument).
    if is_head_pred == 1:
        q, sign = rels - tails, 1.0     # dist = || candidate + (r - t) ||_p
    else:
        q, sign = heads + rels, -1.0    # dist = || (h + r) - candidate ||_p
    score = transe_score(q, hn, sign=sign, gamma=gamma, norm=norm)
    return hn, score


# ----------------------------- parameter init -------------------------------

def init_linear(key, in_dim, out_dim):
    k1, k2 = jax.random.split(key)
    bound = 1.0 / (in_dim ** 0.5)
    return {
        "w": jax.random.uniform(k1, (in_dim, out_dim), jnp.float32, -bound, bound),
        "b": jax.random.uniform(k2, (out_dim,), jnp.float32, -bound, bound),
    }


def init_bn(dim):
    return {
        "gamma": jnp.ones((dim,), jnp.float32),
        "beta": jnp.zeros((dim,), jnp.float32),
        "running_mean": jnp.zeros((dim,), jnp.float32),
        "running_var": jnp.ones((dim,), jnp.float32),
    }


def init_compgcn_layer(key, in_dim, out_dim):
    ks = jax.random.split(key, 3)
    return {
        "W_O": init_linear(ks[0], in_dim, out_dim),
        "W_I": init_linear(ks[1], in_dim, out_dim),
        "W_S": init_linear(ks[2], in_dim, out_dim),
        "bn": init_bn(out_dim),
    }


def init_model(key, in_emb_dim, gcn_emb_dim, gcn_layer):
    ks = jax.random.split(key, 4)
    params = {
        "gnn1": init_compgcn_layer(ks[0], in_emb_dim, gcn_emb_dim),
        "W_rel1": init_linear(ks[1], in_emb_dim, gcn_emb_dim),
    }
    if gcn_layer == 2:
        params["gnn2"] = init_compgcn_layer(ks[2], gcn_emb_dim, gcn_emb_dim)
        params["W_rel2"] = init_linear(ks[3], gcn_emb_dim, gcn_emb_dim)  # unused in forward
    return params


# --------------------------------- main --------------------------------------

if __name__ == "__main__":
    # model config
    in_emb_dim = 32
    gcn_emb_dim = 32
    gcn_layer = 2
    gamma = 9.0
    is_head_pred = 1

    # synthetic graph / inputs
    num_nodes = 12
    num_edges = 16
    num_rels = 5
    batch = 2

    key = jax.random.PRNGKey(0)
    k_param, k_src, k_dst, k_evid, k_node, k_edge, k_h, k_r, k_t = jax.random.split(key, 9)

    params = init_model(k_param, in_emb_dim, gcn_emb_dim, gcn_layer)

    src = jax.random.randint(k_src, (num_edges,), 0, num_nodes, dtype=jnp.int32)
    dst = jax.random.randint(k_dst, (num_edges,), 0, num_nodes, dtype=jnp.int32)
    e_vid = jax.random.randint(k_evid, (num_edges, 1), 0, num_rels, dtype=jnp.int32)

    node_embs = jax.random.normal(k_node, (num_nodes, in_emb_dim), jnp.float32)
    edge_embs = jax.random.normal(k_edge, (num_rels, in_emb_dim), jnp.float32)

    hids = jax.random.randint(k_h, (batch,), 0, num_nodes, dtype=jnp.int32)
    rids = jax.random.randint(k_r, (batch,), 0, num_rels, dtype=jnp.int32)
    tids = jax.random.randint(k_t, (batch,), 0, num_nodes, dtype=jnp.int32)

    ok = True
    for norm in (1, 2):   # exercise both the VPU L1 path and the MXU Gram-matrix L2 path
        hn, score = compgcn_transe_forward(
            params, src, dst, e_vid, node_embs, edge_embs,
            hids, rids, tids, is_head_pred, gamma, norm, gcn_layer)
        hn = jax.block_until_ready(hn)
        score = jax.block_until_ready(score)
        ok &= hn.shape == (num_nodes, gcn_emb_dim)
        ok &= score.shape == (batch, num_nodes)
        ok &= bool(jnp.all(jnp.isfinite(hn))) and bool(jnp.all(jnp.isfinite(score)))
        ok &= bool(jnp.all(score >= 0.0)) and bool(jnp.all(score <= 1.0))

    assert ok
    print("KERNEL_OK")
</pallas_src>

<mosaic_0001>
module attributes {stable_mosaic.version = 11 : i64} {
  func.func @_linear_kernel(%arg0: i32, %arg1: memref<16x32xbf16, #tpu.memory_space<vmem>>, %arg2: memref<32x128xbf16, #tpu.memory_space<vmem>>, %arg3: memref<1x128xf32, #tpu.memory_space<vmem>>, %arg4: memref<16x128xf32, #tpu.memory_space<vmem>>) attributes {dimension_semantics = [#tpu.dimension_semantics<parallel>], iteration_bounds = array<i64: 2>, scalar_prefetch = 0 : i64, scratch_operands = 0 : i64, tpu.core_type = #tpu.core_type<tc>, window_params = [{transform_indices = @transform_0, window_bounds = array<i64: 16, 32>}, {pipeline_mode = #tpu.pipeline_mode<synchronous>, transform_indices = @transform_1, window_bounds = array<i64: 32, 128>}, {pipeline_mode = #tpu.pipeline_mode<synchronous>, transform_indices = @transform_2, window_bounds = array<i64: 1, 128>}, {transform_indices = @transform_3, window_bounds = array<i64: 16, 128>}]} {
    %c0 = arith.constant 0 : index
    %c0_0 = arith.constant 0 : index
    %0 = vector.load %arg1[%c0, %c0_0] : memref<16x32xbf16, #tpu.memory_space<vmem>>, vector<16x32xbf16>
    %c0_1 = arith.constant 0 : index
    %c0_2 = arith.constant 0 : index
    %1 = vector.load %arg2[%c0_1, %c0_2] : memref<32x128xbf16, #tpu.memory_space<vmem>>, vector<32x128xbf16>
    %cst = arith.constant dense<0.000000e+00> : vector<16x128xf32>
    %2 = tpu.matmul %0, %1, %cst {dimension_numbers = #tpu.dot_dimension_numbers<[1], [0], [0], [1], [0, 0, 1, 1], [], []>} : vector<16x32xbf16>, vector<32x128xbf16>, vector<16x128xf32> -> vector<16x128xf32>
    %c0_3 = arith.constant 0 : index
    %c0_4 = arith.constant 0 : index
    %3 = vector.load %arg3[%c0_3, %c0_4] : memref<1x128xf32, #tpu.memory_space<vmem>>, vector<1x128xf32>
    %4 = vector.broadcast %3 : vector<1x128xf32> to vector<16x128xf32>
    %5 = arith.addf %2, %4 : vector<16x128xf32>
    %c0_5 = arith.constant 0 : index
    %c0_6 = arith.constant 0 : index
    %6 = vector.load %arg4[%c0_5, %c0_6] : memref<16x128xf32, #tpu.memory_space<vmem>>, vector<16x128xf32>
    tpu.vector_store %arg4[%c0_5, %c0_6], %5 {strides = array<i32>} : memref<16x128xf32, #tpu.memory_space<vmem>>, vector<16x128xf32>,
    return
  }
  func.func @transform_0(%arg0: i32) -> (i32, i32) {
    %c0_i32 = arith.constant 0 : i32
    %c0_i32_0 = arith.constant 0 : i32
    return %arg0, %c0_i32 : i32, i32
  }
  func.func @transform_1(%arg0: i32) -> (i32, i32) {
    %c0_i32 = arith.constant 0 : i32
    %c0_i32_0 = arith.constant 0 : i32
    %c0_i32_1 = arith.constant 0 : i32
    return %c0_i32, %c0_i32_0 : i32, i32
  }
  func.func @transform_2(%arg0: i32) -> (i32, i32) {
    %c0_i32 = arith.constant 0 : i32
    %c0_i32_0 = arith.constant 0 : i32
    %c0_i32_1 = arith.constant 0 : i32
    return %c0_i32, %c0_i32_0 : i32, i32
  }
  func.func @transform_3(%arg0: i32) -> (i32, i32) {
    %c0_i32 = arith.constant 0 : i32
    %c0_i32_0 = arith.constant 0 : i32
    return %arg0, %c0_i32 : i32, i32
  }
}

</mosaic_0001>

<bundles_post_ra>
// kernel: tpu_custom_call.1
= control target key start
LH: loop header
LB: loop body
LE: loop exit
PB: predicated region body
PF: predicated region fallthrough
CT: control target
= control target key end

     0   :  { %8 = vsyncpa [#allocation3], 0  ;;  %s879_s0 = inlined_call_operand.hbm [shape: bf16[18,32], index: 0, kind: input, shape index: {}]   ;;  %s880_s1 = inlined_call_operand.hbm [shape: bf16[32,128], index: 1, kind: input, shape index: {}]   ;;  %s881_s2 = inlined_call_operand.vmem [shape: f32[1,128], index: 2, kind: input, shape index: {}]   ;;  %s882_s3 = inlined_call_operand.hbm [shape: f32[18,128], index: 3, kind: output, shape index: {}]  }
   0x1   :  { %10 = vsyncpa [#allocation3 + $0x1], 0 }
   0x2   :  { %11 = vsyncpa [#allocation6], 0 }
   0x3   :  { %12 = vsyncpa [#allocation4], 0 }
   0x4   :  { %14 = vsyncpa [#allocation4 + $0x1], 0  ;;  %s663_s12 = smov 0   ;;  %s665_s13 = smov 0  }
   0x5   :  { %s667_s14 = smov 0   ;;  %s669_s15 = smov 0  }
   0x6 LB: > { %s684_s16 = sadd.s32 4294967295, %s630_s15   ;;  %s401_s17 = sadd.s32 4294967294, %s630_s15   ;;  %s630_s15 = sphi %s669_s15, %s902_s15   ;;  %s626_s14 = sphi %s667_s14, %s901_s14   ;;  %s622_s13 = sphi %s665_s13, %s900_s13   ;;  %s618_s12 = sphi %s663_s12, %s899_s12  }
   0x7   : > { %s688_s18 = sadd.s32 1, %s630_s15   ;;  %s27_s19 = sadd.s32 1, %s626_s14 }
   0x8   : > { %s24_s20 = ssub.s32 %s630_s15, %s688_s18  ;;  %p34_p0 = scmp.ne.s32.totalorder %s626_s14, %s622_s13 }
   0x9   : > { %p25_p1 = scmp.eq.s32.totalorder %s24_s20, 0  ;;  %p35_p2 = scmp.eq.s32.totalorder %s630_s15, 0 }
   0xa   : > { %p40_p3 = scmp.ne.s32.totalorder %s622_s13, %s618_s12  ;;  %p883_p4 = scmp.eq.s32.totalorder %s684_s16, 0 }
   0xb   : > { %s700_s21 = scalar_select %p25_p1, %s626_s14, %s27_s19  }
   0xc   : > { %p702_p5 = por %p35_p2, %p34_p0  ;;  %p708_p6 = por %p883_p4, %p40_p3 }
   0xd   : > { %p106_p7 = scmp.eq.s32.totalorder %s684_s16, 1  ;;  %p112_p8 = scmp.eq.s32.totalorder %s401_s17, 1 }
   0xe   : > { %s886_s22 = scalar_select %p702_p5, 1, 0 }
   0xf   : > { %s887_s23 = scalar_select %p708_p6, 1, 0 }
  0x10   : > { %p402_p9 = scmp.ge.s32.totalorder %s630_s15, 1  ;;  %p119_p10 = scmp.lt.s32.totalorder %s630_s15, 3 }
  0x11   : > { %p715_p11 = por %p106_p7, %p34_p0  ;;  %p719_p12 = por %p112_p8, %p40_p3 }
  0x12   : > { %p723_p13 = pnand %p402_p9, %p119_p10  ;;  %s632_s27 = smov [#allocation5]  }
  0x13   : > { %s888_s24 = scalar_select %p715_p11, 1, 0 }
  0x14   : > { %s889_s25 = scalar_select %p719_p12, 1, 0 }
  0x15   : > { %s890_s26 = scalar_select %p723_p13, 1, 0 }
  0x16   : > { %p449_p1 = pneg %p723_p13  ;;  %s131_s28 = sshll.u32 %s632_s27, 4  ;;  %s132_s28 = int_to_ptr.vmem [resolvable:$true] %s131_s28 }
  0x17   : > { %s504_s5 = scalar_lea.hbm %s880_s1, 256 }
  0x18   : > { %p731_p2 = pnand %p449_p1, %p883_p4  ;;  %p505_p0 = scmp.ne.s32.totalorder %s880_s1, %s504_s5 }
  0x19   : > { %p511_p9 = scmp.lt.u32.totalorder %s504_s5, %s880_s1 }
  0x1a   : > { %p506_p3 = pneg %p731_p2 }
  0x1c   : > { %p507_p7 = pnand %p506_p3, %p505_p0 }
  0x1e   : > { %p508_p8 = pneg %p507_p7 }
  0x20   : > { %p513_p10 = pnand %p511_p9, %p508_p8 }
  0x22   : > { %516 = shalt.err (!%p513_p10)
}
  0x23   : > { %s517_s10 = scalar_lea.vmem %s132_s28, 256  ;;  %p525_p11 = scmp.lt.s32.totalorder %s132_s28, %s132_s28 }
  0x24   : > { %p518_p1 = scmp.ne.s32.totalorder %s132_s28, %s517_s10  ;;  %p526_p6 = scmp.lt.s32.totalorder %s517_s10, %s517_s10 }
  0x26   : > { %p520_p4 = pnand %p518_p1, %p506_p3  ;;  %p527_p13 = por %p526_p6, %p525_p11 }
  0x28   : > { %p521_p12 = pneg %p520_p4 }
  0x2a   : > { %p528_p5 = pnand %p527_p13, %p521_p12 }
  0x2c   : > { %531 = shalt.err (!%p528_p5)
}
  0x2d   : > { %s633_s11 = smov 64   ;;  %s634_s17 = smov 4  }
  0x2e   : > { %452 = dma.hbm_to_vmem [thread:$0]  (!%p731_p2), %s880_s1, 256, %s132_s28, [#allocation6], %s633_s11, %s633_s11, %s634_s17  }
  0x2f   : > { %p404_p0 = scmp.ge.s32.totalorder %s630_s15, 2 }
  0x30   : > { %p892_p4 = scmp.ne.s32.totalorder (!%p404_p0), %s886_s22, 0 }
  0x31   : > { %144 = sbr.rel (%p404_p0) target bundleno = 91 (0x5b), region = 24 }
  0x38   : > { %147 = sbr.rel (!%p892_p4) target bundleno = 91 (0x5b), region = 28  ;;  %s148_s27 = sand.u32 (%p892_p4), 1, %s626_s14  }
  0x39   : > { %s406_s30 = sshll.u32 (%p892_p4), %s630_s15, 1  ;;  %s405_s4 = sshll.u32 (%p892_p4), %s148_s27, 3 }
  0x3a   : > { %s154_s5 = ssub.s32 (%p892_p4), 3, %s406_s30  ;;  %s761_s6 = scalar_lea.sflag (%p892_p4), [#allocation3], %s148_s27 }
  0x3b   : > { %p155_p5 = scmp.lt.s32.totalorder (%p892_p4), %s154_s5, 2  ;;  %s152_s7 = scalar_lea.vmem (%p892_p4), [#allocation2], %s405_s4 }
  0x3f   : > { %s904_s5 = smov (!%p155_p5, %s154_s5), 2 }
  0x40   : > { %s758_s29 = sshll.u32 %s904_s5, 6 }
  0x41   : > { %s159_s28 = ssub.s32 128, %s758_s29 }
  0x42   : > { %160 = vsyncadd %s761_s6, %s159_s28  ;;  %p408_p6 = scmp.ne.s32.totalorder %s758_s29, 0  ;;  %s430_s22 = sshll.u32 %s630_s15, 7 }
  0x43   : > { %s769_s10 = scalar_lea.hbm %s879_s0, %s430_s22  ;;  %s165_s11 = sshll.u32 %s152_s7, 4  ;;  %s771_s11 = int_to_ptr.vmem [resolvable:$true] %s165_s11 }
  0x44   : > { %s532_s17 = scalar_lea.hbm %s769_s10, %s758_s29  ;;  %s536_s27 = scalar_lea.hbm %s879_s0, 192 }
  0x45   : > { %p533_p11 = scmp.ne.s32.totalorder %s769_s10, %s532_s17  ;;  %p537_p2 = scmp.lt.u32.totalorder %s769_s10, %s879_s0 }
  0x46   : > { %p538_p3 = scmp.lt.u32.totalorder %s536_s27, %s532_s17  ;;  %p540_p8 = scmp.lt.u32.totalorder %s532_s17, %s769_s10 }
  0x47   : > { %p534_p12 = pnand %p533_p11, %p408_p6 }
  0x48   : > { %p539_p7 = por %p538_p3, %p537_p2 }
  0x49   : > { %p535_p13 = pneg %p534_p12 }
  0x4a   : > { %p541_p9 = por %p540_p8, %p539_p7 }
  0x4c   : > { %p542_p10 = pnand %p541_p9, %p535_p13 }
  0x4e   : > { %545 = shalt.err (!%p542_p10)
}
  0x4f   : > { %s546_s5 = scalar_lea.vmem %s771_s11, %s758_s29  ;;  %s635_s28 = smov [#allocation2]  }
  0x50   : > { %p547_p1 = scmp.ne.s32.totalorder %s771_s11, %s546_s5  ;;  %s550_s7 = sshll.u32 %s635_s28, 4  ;;  %s551_s7 = int_to_ptr.vmem [resolvable:$false] %s550_s7 }
  0x51   : > { %s552_s22 = scalar_lea.vmem %s551_s7, 256  ;;  %p553_p11 = scmp.lt.s32.totalorder %s771_s11, %s551_s7 }
  0x52   : > { %p548_p4 = pnand %p547_p1, %p408_p6  ;;  %p554_p12 = scmp.lt.s32.totalorder %s552_s22, %s546_s5 }
  0x54   : > { %p549_p5 = pneg %p548_p4  ;;  %p555_p2 = por %p554_p12, %p553_p11 }
  0x56   : > { %p556_p3 = pnand %p555_p2, %p549_p5 }
  0x58   : > { %559 = shalt.err (!%p556_p3)
}
  0x59   : > { %s636_s8 = smov 64   ;;  %s637_s9 = smov 4  }
  0x5a   : > { %171 = dma.hbm_to_vmem [thread:$0]  (%p408_p6), %s769_s10, %s758_s29, %s771_s11, %s761_s6, %s636_s8, %s636_s8, %s637_s9  }
  0x5b PF: > { %p893_p13 = scmp.ne.s32.totalorder %s890_s26, 0 }
  0x5c   : > { %s801_s17 = sand.u32 (!%p893_p13), 1, %s622_s13   ;;  %p894_p7 = scmp.ne.s32.totalorder (!%p893_p13), %s887_s23, 0 }
  0x5d   : > { %177 = sbr.rel (%p893_p13) target bundleno = 358 (0x166), region = 32  ;;  %s413_s19 = sshll.u32 (!%p893_p13), %s801_s17, 3 }
  0x5e   : > { %s180_s20 = scalar_lea.sflag (!%p893_p13), [#allocation3], %s801_s17  ;;  %s183_s27 = scalar_lea.vmem (!%p893_p13), [#allocation2], %s413_s19 }
  0x64   : > { %605 = dma.done.wait (%p894_p7), %s180_s20, 128  }
  0x65   : > { %607 = vsyncadd (%p894_p7), %s180_s20, 4294967168  ;;  %p895_p6 = scmp.eq.s32.totalorder %s684_s16, 0 }
  0x67   : > { %609 = dma.done.wait (%p895_p6), [#allocation6], 256   ;;  %p896_p8 = pmov %p895_p6 }
  0x68   : > { %v638_v0 = vmov 0.0   ;;  %vm639_vm0 = vmmov 0   ;;  %v501_v1 = vld [vmem:[#allocation5] sm:$0xff]   ;;  %v502_v2 = vld [vmem:[#allocation5 + $0x8] sm:$0xff]   ;;  %v503_v3 = vld [vmem:[%s183_s27] sm:$0xff]   ;;  %vm251_vm1 = vcmask 261120  }
  0x69   : > { %611 = vsyncadd (%p896_p8), [#allocation6], 4294967040  ;;  %435 = vmatprep.subr.bf16.mxu0 %v638_v0  ;;  %439 = vmatprep.mubr.msk.bf16.mxu0 %vm639_vm0, %v638_v0  ;;  %s415_s23 = sshll.u32 %s801_s17, 4  ;;  %v416_v4 = vld [vmem:[%s881_s2] ss:$0 sm:$0xff]  ;;  %s299_s10 = scalar_lea.sflag [#allocation4], %s801_s17 }
  0x6a   : > { %436 = vmatpush3.bf16.msra.mxu0 %v501_v1  ;;  %s209_s6 = scalar_lea.vmem [#allocation7], %s415_s23  ;;  %p897_p9 = scmp.ne.s32.totalorder %s888_s24, 0 }
  0x6b   : > { %437 = vmatprep.subr.bf16.mxu0 %v638_v0  ;;  %s422_s11 = sshll.u32 (%p897_p9), %s684_s16, 1 }
  0x6c   : > { %s307_s30 = ssub.s32 (%p897_p9), 3, %s422_s11 }
  0x6d   : > { %p308_p10 = scmp.lt.s32.totalorder (%p897_p9), %s307_s30, 2 }
  0x6e   : > { %438 = vmatpush3.bf16.msra.mxu0 %v502_v2 }
  0x71   : > { %440 = vmatmul.mubr.msk.bf16.vlgmr.msra.gmra.mrb[0].mxu0 %vm251_vm1, %v503_v3 }
 0x143   : > { %305 = sbr.rel (!%p897_p9) target bundleno = 358 (0x166), region = 44 }
 0x144   : > { %v289_v5 = vpop.f32.mrb[0].mxu0 }
 0x145   : > { %v290_v6 = vadd.f32 %v416_v4, %v289_v5  ;;  %v441_v7 = vpop.f32.mrb[1].mxu0 }
 0x146   : > { %v292_v8 = vpop.f32.mrb[2].mxu0 }
 0x147   : > { %296 = vst [vmem:[%s209_s6] sm:$0xff] %v290_v6  ;;  %v293_v9 = vadd.f32 %v416_v4, %v292_v8  ;;  %v442_v10 = vpop.f32.mrb[3].mxu0 }
 0x149   : > { %297 = vst [vmem:[%s209_s6 + $0x8] sm:$0xff] %v293_v9 }
 0x14a   : > { %s906_s30 = smov (!%p308_p10, %s307_s30), 2 }
 0x14b   : > { %s821_s4 = sshll.u32 %s906_s30, 7 }
 0x14c   : > { %s312_s5 = ssub.s32 256, %s821_s4 }
 0x14d   : > { %313 = vsyncadd %s299_s10, %s312_s5  ;;  %p424_p1 = scmp.ne.s32.totalorder %s821_s4, 0  ;;  %s431_s28 = sshll.u32 %s684_s16, 8 }
 0x14e   : > { %s831_s22 = scalar_lea.hbm %s882_s3, %s431_s28  ;;  %s318_s8 = sshll.u32 %s209_s6, 4  ;;  %s833_s8 = int_to_ptr.vmem [resolvable:$true] %s318_s8 }
 0x14f   : > { %s560_s9 = scalar_lea.vmem %s833_s8, %s821_s4  ;;  %s640_s19 = smov [#allocation7]  }
 0x150   : > { %p561_p4 = scmp.ne.s32.totalorder %s833_s8, %s560_s9  ;;  %s564_s20 = sshll.u32 %s640_s19, 4  ;;  %s565_s20 = int_to_ptr.vmem [resolvable:$false] %s564_s20 }
 0x151   : > { %s566_s16 = scalar_lea.vmem %s565_s20, 512  ;;  %p567_p12 = scmp.lt.s32.totalorder %s833_s8, %s565_s20 }
 0x152   : > { %p562_p5 = pnand %p561_p4, %p424_p1  ;;  %p568_p2 = scmp.lt.s32.totalorder %s566_s16, %s560_s9 }
 0x154   : > { %p563_p11 = pneg %p562_p5  ;;  %p569_p3 = por %p568_p2, %p567_p12 }
 0x156   : > { %p570_p13 = pnand %p569_p3, %p563_p11 }
 0x158   : > { %573 = shalt.err (!%p570_p13)
}
 0x159   : > { %s574_s27 = scalar_lea.hbm %s831_s22, %s821_s4  ;;  %s578_s29 = scalar_lea.hbm %s882_s3, 384 }
 0x15a   : > { %p575_p7 = scmp.ne.s32.totalorder %s831_s22, %s574_s27  ;;  %p579_p9 = scmp.lt.u32.totalorder %s831_s22, %s882_s3 }
 0x15b   : > { %p580_p10 = scmp.lt.u32.totalorder %s578_s29, %s574_s27  ;;  %p582_p5 = scmp.lt.u32.totalorder %s574_s27, %s831_s22 }
 0x15c   : > { %p576_p6 = pnand %p575_p7, %p424_p1 }
 0x15d   : > { %p581_p4 = por %p580_p10, %p579_p9 }
 0x15e   : > { %p577_p8 = pneg %p576_p6 }
 0x15f   : > { %p583_p11 = por %p582_p5, %p581_p4 }
 0x161   : > { %p584_p12 = pnand %p583_p11, %p577_p8 }
 0x163   : > { %587 = shalt.err (!%p584_p12)
}
 0x164   : > { %s641_s30 = smov 128   ;;  %s642_s5 = smov 8  }
 0x165   : > { %324 = dma.vmem_to_hbm [thread:$0]  (%p424_p1), %s833_s8, %s821_s4, %s831_s22, %s299_s10, %s641_s30, %s641_s30, %s642_s5  }
 0x166 PF: > { %s333_s28 = sand.u32 1, %s618_s12   ;;  %p898_p2 = scmp.ne.s32.totalorder %s889_s25, 0 }
 0x167   : > { %s334_s24 = scalar_lea.sflag [#allocation4], %s333_s28 }
 0x168   : > { %p454_p3 = pnand %p404_p0, %p898_p2 }
 0x16a   : > { %613 = dma.done.wait (!%p454_p3), %s334_s24, 256  }
 0x16b   : > { %615 = vsyncadd (!%p454_p3), %s334_s24, 4294967040  ;;  %p17_p13 = scmp.ge.s32.totalorder %s688_s18, 4   ;;  %s899_s12 = smov %s622_s13 }
 0x16c   : > { %s900_s13 = smov %s626_s14  ;;  %s901_s14 = smov %s700_s21 }
 0x16d   : > { %s902_s15 = smov %s688_s18  ;;  %19 = sbr.rel (!%p17_p13) target bundleno = 6 (0x6), region = 81 }
 0x174   :  { %339 = vsyncpa [#allocation3], 1 }
 0x175   :  { %341 = vsyncpa [#allocation3 + $0x1], 1 }
 0x176   :  { %342 = vsyncpa [#allocation6], 1 }
 0x177   :  { %343 = vsyncpa [#allocation4], 1 }
 0x178   :  { %345 = vsyncpa [#allocation4 + $0x1], 1 }

</bundles_post_ra>
